<compile_context>
chip_gen: v6e
topology: v6e:2x2x1
jax: 0.10.0
libtpu: 0.0.40
codegen_flags: <defaults>
</compile_context>

<pallas_src>
import functools

import jax
import jax.numpy as jnp
from jax.experimental import pallas as pl
from jax.experimental.pallas import tpu as pltpu


_SUBLANE = 8
_LANE = 128
_TILE_BUDGET_BYTES = 6 * 1024 * 1024   # double-buffered block-buffer budget
_DEFAULT_MAX_TILE_ROWS = 1024


def _pick_tile_rows(n, per_row_bytes, max_tile_rows):
    """Fixed-budget row tile, independent of n's divisors."""
    t = _TILE_BUDGET_BYTES // max(per_row_bytes, 1)
    t = min(t, max_tile_rows)
    t = max(_SUBLANE, (t // _SUBLANE) * _SUBLANE)
    if n <= t:
        return n            # single tile; block == full array dim is always legal
    return t


def _cls_loss_kernel(x1_ref, y1_ref, x2_ref, y2_ref, x3_ref, y3_ref,
                     m1_ref, m2_ref, m3_ref, psum_ref, *,
                     n_rows, tile_rows, need_row_mask):
    """Per row tile: write the three (gt > 0) mask blocks and one (1, 8, 128)
    slab holding this tile's three partial BCE sums (lanes 0..2 of sublane 0)."""
    if need_row_mask:
        base = pl.program_id(0) * tile_rows
        rows = jax.lax.broadcasted_iota(jnp.int32, (tile_rows, 1), 0) + base
        rvalid = rows < n_rows

    sums = []
    for x_ref, y_ref, m_ref in ((x1_ref, y1_ref, m1_ref),
                                (x2_ref, y2_ref, m2_ref),
                                (x3_ref, y3_ref, m3_ref)):
        x = x_ref[...].astype(jnp.float32)
        y = y_ref[...].astype(jnp.float32)
        # Numerically stable elementwise BCE-with-logits (== BCEWithLogitsLoss):
        #   max(x, 0) - x*y + log1p(exp(-|x|))
        elem = jnp.maximum(x, 0.0) - x * y + jnp.log1p(jnp.exp(-jnp.abs(x)))
        if need_row_mask:
            # Zero-padded rows are NOT loss-neutral (they contribute log 2);
            # mask the out-of-bounds rows of the last partial tile.
            elem = jnp.where(rvalid, elem, 0.0)
        m_ref[...] = (y > 0.0).astype(m_ref.dtype)
        sums.append(jnp.sum(elem))

    sub = jax.lax.broadcasted_iota(jnp.int32, psum_ref.shape, 1)
    lane = jax.lax.broadcasted_iota(jnp.int32, psum_ref.shape, 2)
    vec = jnp.zeros(psum_ref.shape, dtype=jnp.float32)
    for k, s in enumerate(sums):
        vec = jnp.where(jnp.logical_and(sub == 0, lane == k), s, vec)
    psum_ref[...] = vec


def cls_loss_forward(pred, gt4loss, obj_pred, obj_gt, rela_pred, rela_gt,
                     max_tile_rows=_DEFAULT_MAX_TILE_ROWS):
    """Pallas equivalent of cls_loss.forward: returns the six-tuple
    (bce_pred, mask_pred, bce_obj, mask_obj, bce_rela, mask_rela)."""
    preds = (pred, obj_pred, rela_pred)
    gts = (gt4loss, obj_gt, rela_gt)

    n = int(pred.shape[0])
    for p, g in zip(preds, gts):
        assert p.shape == g.shape and int(p.shape[0]) == n

    sizes = tuple(int(p.shape[1]) for p in preds)

    # VMEM budget per row (pred + gt in native dtype + f32 mask), double-buffered.
    per_row_bytes = 0
    for p, g, c in zip(preds, gts, sizes):
        per_row_bytes += c * (p.dtype.itemsize + g.dtype.itemsize + 4)
    per_row_bytes *= 2

    tile = _pick_tile_rows(n, per_row_bytes, max_tile_rows)
    grid_rows = pl.cdiv(n, tile)
    need_row_mask = (n % tile) != 0

    kernel = functools.partial(
        _cls_loss_kernel,
        n_rows=n,
        tile_rows=tile,
        need_row_mask=need_row_mask,
    )

    c1, c2, c3 = sizes
    row_spec = lambda c: pl.BlockSpec((tile, c), lambda i: (i, 0))

    mask1, mask2, mask3, partials = pl.pallas_call(
        kernel,
        out_shape=(
            jax.ShapeDtypeStruct((n, c1), jnp.float32),            # (gt4loss > 0)
            jax.ShapeDtypeStruct((n, c2), jnp.float32),            # (obj_gt  > 0)
            jax.ShapeDtypeStruct((n, c3), jnp.float32),            # (rela_gt > 0)
            jax.ShapeDtypeStruct((grid_rows, 8, 128), jnp.float32),  # partial sums
        ),
        grid=(grid_rows,),
        in_specs=[
            row_spec(c1), row_spec(c1),
            row_spec(c2), row_spec(c2),
            row_spec(c3), row_spec(c3),
        ],
        out_specs=(
            row_spec(c1),
            row_spec(c2),
            row_spec(c3),
            pl.BlockSpec((1, 8, 128), lambda i: (i, 0, 0)),
        ),
        # Each grid step owns its own output blocks (no resident accumulator),
        # so the row axis can be sharded across v7x's two TensorCores.
        compiler_params=pltpu.CompilerParams(
            dimension_semantics=("parallel",),
            vmem_limit_bytes=32 * 1024 * 1024,
        ),
    )(pred, gt4loss, obj_pred, obj_gt, rela_pred, rela_gt)

    # Trivial finalize on a few KB: sum tile partials, scale by precomputed 1/(N*C).
    seg = jnp.sum(partials[:, 0, :], axis=0)          # (128,)
    bce1 = seg[0] * (1.0 / (n * c1))
    bce2 = seg[1] * (1.0 / (n * c2))
    bce3 = seg[2] * (1.0 / (n * c3))
    return (bce1, mask1, bce2, mask2, bce3, mask3)


def _reference_bce(pred, gt):
    x = pred.astype(jnp.float32)
    y = gt.astype(jnp.float32)
    elem = jnp.maximum(x, 0.0) - x * y + jnp.log1p(jnp.exp(-jnp.abs(x)))
    return jnp.mean(elem)


def _check(pred, gt4loss, obj_pred, obj_gt, rela_pred, rela_gt, **kw):
    outs = cls_loss_forward(pred, gt4loss, obj_pred, obj_gt, rela_pred, rela_gt, **kw)
    outs = jax.block_until_ready(outs)
    bce_pred, mask_pred, bce_obj, mask_obj, bce_rela, mask_rela = outs

    assert jnp.allclose(bce_pred, _reference_bce(pred, gt4loss), rtol=1e-4, atol=1e-5)
    assert jnp.allclose(bce_obj, _reference_bce(obj_pred, obj_gt), rtol=1e-4, atol=1e-5)
    assert jnp.allclose(bce_rela, _reference_bce(rela_pred, rela_gt), rtol=1e-4, atol=1e-5)
    assert jnp.array_equal(mask_pred, (gt4loss > 0).astype(jnp.float32))
    assert jnp.array_equal(mask_obj, (obj_gt > 0).astype(jnp.float32))
    assert jnp.array_equal(mask_rela, (rela_gt > 0).astype(jnp.float32))


if __name__ == "__main__":
    key = jax.random.PRNGKey(0)
    k = jax.random.split(key, 12)

    # --- Small shapes (single-tile grid path, as in the module's typical use). ---
    triplet_size = 128   # cls_loss(triplet_size)
    n = 8
    n_obj_cls = 64
    n_rela_cls = 32

    pred = jax.random.normal(k[0], (n, triplet_size), dtype=jnp.float32)
    gt4loss = (jax.random.uniform(k[1], (n, triplet_size)) > 0.8).astype(jnp.float32)
    obj_pred = jax.random.normal(k[2], (n, n_obj_cls), dtype=jnp.float32)
    obj_gt = (jax.random.uniform(k[3], (n, n_obj_cls)) > 0.7).astype(jnp.float32)
    rela_pred = jax.random.normal(k[4], (n, n_rela_cls), dtype=jnp.float32)
    rela_gt = (jax.random.uniform(k[5], (n, n_rela_cls)) > 0.7).astype(jnp.float32)

    _check(pred, gt4loss, obj_pred, obj_gt, rela_pred, rela_gt)

    # --- Awkward n + non-128 class widths: exercises the cdiv grid, the
    #     partial-last-tile row mask, and masked tail stores (small tile forced). ---
    n2, c1, c2, c3 = 100, 200, 80, 48
    pred2 = jax.random.normal(k[6], (n2, c1), dtype=jnp.float32)
    gt2 = (jax.random.uniform(k[7], (n2, c1)) > 0.8).astype(jnp.float32)
    opred2 = jax.random.normal(k[8], (n2, c2), dtype=jnp.float32)
    ogt2 = (jax.random.uniform(k[9], (n2, c2)) > 0.7).astype(jnp.float32)
    rpred2 = jax.random.normal(k[10], (n2, c3), dtype=jnp.float32)
    rgt2 = (jax.random.uniform(k[11], (n2, c3)) > 0.7).astype(jnp.float32)

    _check(pred2, gt2, opred2, ogt2, rpred2, rgt2, max_tile_rows=32)

    print("KERNEL_OK")
</pallas_src>

<mosaic_0001>
module attributes {stable_mosaic.version = 11 : i64} {
  func.func @_cls_loss_kernel(%arg0: i32, %arg1: memref<8x128xf32, #tpu.memory_space<vmem>>, %arg2: memref<8x128xf32, #tpu.memory_space<vmem>>, %arg3: memref<8x64xf32, #tpu.memory_space<vmem>>, %arg4: memref<8x64xf32, #tpu.memory_space<vmem>>, %arg5: memref<8x32xf32, #tpu.memory_space<vmem>>, %arg6: memref<8x32xf32, #tpu.memory_space<vmem>>, %arg7: memref<8x128xf32, #tpu.memory_space<vmem>>, %arg8: memref<8x64xf32, #tpu.memory_space<vmem>>, %arg9: memref<8x32xf32, #tpu.memory_space<vmem>>, %arg10: memref<1x8x128xf32, #tpu.memory_space<vmem>>) attributes {dimension_semantics = [#tpu.dimension_semantics<parallel>], iteration_bounds = array<i64: 1>, scalar_prefetch = 0 : i64, scratch_operands = 0 : i64, tpu.core_type = #tpu.core_type<tc>, window_params = [{transform_indices = @transform_0, window_bounds = array<i64: 8, 128>}, {transform_indices = @transform_1, window_bounds = array<i64: 8, 128>}, {transform_indices = @transform_2, window_bounds = array<i64: 8, 64>}, {transform_indices = @transform_3, window_bounds = array<i64: 8, 64>}, {transform_indices = @transform_4, window_bounds = array<i64: 8, 32>}, {transform_indices = @transform_5, window_bounds = array<i64: 8, 32>}, {transform_indices = @transform_6, window_bounds = array<i64: 8, 128>}, {transform_indices = @transform_7, window_bounds = array<i64: 8, 64>}, {transform_indices = @transform_8, window_bounds = array<i64: 8, 32>}, {transform_indices = @transform_9, window_bounds = array<i64: 1, 8, 128>}]} {
    %c0 = arith.constant 0 : index
    %c0_0 = arith.constant 0 : index
    %0 = vector.load %arg1[%c0, %c0_0] : memref<8x128xf32, #tpu.memory_space<vmem>>, vector<8x128xf32>
    %c0_1 = arith.constant 0 : index
    %c0_2 = arith.constant 0 : index
    %1 = vector.load %arg2[%c0_1, %c0_2] : memref<8x128xf32, #tpu.memory_space<vmem>>, vector<8x128xf32>
    %cst = arith.constant 0.000000e+00 : f32
    %2 = vector.broadcast %cst : f32 to vector<8x128xf32>
    %3 = arith.maximumf %0, %2 : vector<8x128xf32>
    %4 = arith.mulf %0, %1 : vector<8x128xf32>
    %5 = arith.subf %3, %4 : vector<8x128xf32>
    %6 = math.absf %0 : vector<8x128xf32>
    %cst_3 = arith.constant 0.000000e+00 : f32
    %7 = vector.broadcast %cst_3 : f32 to vector<8x128xf32>
    %8 = arith.subf %7, %6 : vector<8x128xf32>
    %9 = math.exp %8 : vector<8x128xf32>
    %10 = math.log1p %9 : vector<8x128xf32>
    %11 = arith.addf %5, %10 : vector<8x128xf32>
    %cst_4 = arith.constant 0.000000e+00 : f32
    %12 = vector.broadcast %cst_4 : f32 to vector<8x128xf32>
    %13 = arith.cmpf ogt, %1, %12 : vector<8x128xf32>
    %14 = arith.extui %13 : vector<8x128xi1> to vector<8x128xi32>
    %15 = arith.sitofp %14 : vector<8x128xi32> to vector<8x128xf32>
    %c0_5 = arith.constant 0 : index
    %c0_6 = arith.constant 0 : index
    %16 = vector.load %arg7[%c0_5, %c0_6] : memref<8x128xf32, #tpu.memory_space<vmem>>, vector<8x128xf32>
    tpu.vector_store %arg7[%c0_5, %c0_6], %15 {strides = array<i32>} : memref<8x128xf32, #tpu.memory_space<vmem>>, vector<8x128xf32>,
    %17 = vector.shape_cast %11 : vector<8x128xf32> to vector<1x8x128xf32>
    %cst_7 = arith.constant dense<0.000000e+00> : vector<1xf32>
    %18 = vector.multi_reduction <add>, %17, %cst_7 [1, 2] : vector<1x8x128xf32> to vector<1xf32>
    %19 = vector.shape_cast %18 : vector<1xf32> to vector<1x1x1xf32>
    %20 = vector.extract %19[0, 0, 0] : f32 from vector<1x1x1xf32>
    %c0_8 = arith.constant 0 : index
    %c0_9 = arith.constant 0 : index
    %21 = vector.load %arg3[%c0_8, %c0_9] : memref<8x64xf32, #tpu.memory_space<vmem>>, vector<8x64xf32>
    %c0_10 = arith.constant 0 : index
    %c0_11 = arith.constant 0 : index
    %22 = vector.load %arg4[%c0_10, %c0_11] : memref<8x64xf32, #tpu.memory_space<vmem>>, vector<8x64xf32>
    %cst_12 = arith.constant 0.000000e+00 : f32
    %23 = vector.broadcast %cst_12 : f32 to vector<8x64xf32>
    %24 = arith.maximumf %21, %23 : vector<8x64xf32>
    %25 = arith.mulf %21, %22 : vector<8x64xf32>
    %26 = arith.subf %24, %25 : vector<8x64xf32>
    %27 = math.absf %21 : vector<8x64xf32>
    %cst_13 = arith.constant 0.000000e+00 : f32
    %28 = vector.broadcast %cst_13 : f32 to vector<8x64xf32>
    %29 = arith.subf %28, %27 : vector<8x64xf32>
    %30 = math.exp %29 : vector<8x64xf32>
    %31 = math.log1p %30 : vector<8x64xf32>
    %32 = arith.addf %26, %31 : vector<8x64xf32>
    %cst_14 = arith.constant 0.000000e+00 : f32
    %33 = vector.broadcast %cst_14 : f32 to vector<8x64xf32>
    %34 = arith.cmpf ogt, %22, %33 : vector<8x64xf32>
    %35 = arith.extui %34 : vector<8x64xi1> to vector<8x64xi32>
    %36 = arith.sitofp %35 : vector<8x64xi32> to vector<8x64xf32>
    %c0_15 = arith.constant 0 : index
    %c0_16 = arith.constant 0 : index
    %37 = vector.load %arg8[%c0_15, %c0_16] : memref<8x64xf32, #tpu.memory_space<vmem>>, vector<8x64xf32>
    tpu.vector_store %arg8[%c0_15, %c0_16], %36 {strides = array<i32>} : memref<8x64xf32, #tpu.memory_space<vmem>>, vector<8x64xf32>,
    %38 = vector.shape_cast %32 : vector<8x64xf32> to vector<1x8x64xf32>
    %cst_17 = arith.constant dense<0.000000e+00> : vector<1xf32>
    %39 = vector.multi_reduction <add>, %38, %cst_17 [1, 2] : vector<1x8x64xf32> to vector<1xf32>
    %40 = vector.shape_cast %39 : vector<1xf32> to vector<1x1x1xf32>
    %41 = vector.extract %40[0, 0, 0] : f32 from vector<1x1x1xf32>
    %c0_18 = arith.constant 0 : index
    %c0_19 = arith.constant 0 : index
    %42 = vector.load %arg5[%c0_18, %c0_19] : memref<8x32xf32, #tpu.memory_space<vmem>>, vector<8x32xf32>
    %c0_20 = arith.constant 0 : index
    %c0_21 = arith.constant 0 : index
    %43 = vector.load %arg6[%c0_20, %c0_21] : memref<8x32xf32, #tpu.memory_space<vmem>>, vector<8x32xf32>
    %cst_22 = arith.constant 0.000000e+00 : f32
    %44 = vector.broadcast %cst_22 : f32 to vector<8x32xf32>
    %45 = arith.maximumf %42, %44 : vector<8x32xf32>
    %46 = arith.mulf %42, %43 : vector<8x32xf32>
    %47 = arith.subf %45, %46 : vector<8x32xf32>
    %48 = math.absf %42 : vector<8x32xf32>
    %cst_23 = arith.constant 0.000000e+00 : f32
    %49 = vector.broadcast %cst_23 : f32 to vector<8x32xf32>
    %50 = arith.subf %49, %48 : vector<8x32xf32>
    %51 = math.exp %50 : vector<8x32xf32>
    %52 = math.log1p %51 : vector<8x32xf32>
    %53 = arith.addf %47, %52 : vector<8x32xf32>
    %cst_24 = arith.constant 0.000000e+00 : f32
    %54 = vector.broadcast %cst_24 : f32 to vector<8x32xf32>
    %55 = arith.cmpf ogt, %43, %54 : vector<8x32xf32>
    %56 = arith.extui %55 : vector<8x32xi1> to vector<8x32xi32>
    %57 = arith.sitofp %56 : vector<8x32xi32> to vector<8x32xf32>
    %c0_25 = arith.constant 0 : index
    %c0_26 = arith.constant 0 : index
    %58 = vector.load %arg9[%c0_25, %c0_26] : memref<8x32xf32, #tpu.memory_space<vmem>>, vector<8x32xf32>
    tpu.vector_store %arg9[%c0_25, %c0_26], %57 {strides = array<i32>} : memref<8x32xf32, #tpu.memory_space<vmem>>, vector<8x32xf32>,
    %59 = vector.shape_cast %53 : vector<8x32xf32> to vector<1x8x32xf32>
    %cst_27 = arith.constant dense<0.000000e+00> : vector<1xf32>
    %60 = vector.multi_reduction <add>, %59, %cst_27 [1, 2] : vector<1x8x32xf32> to vector<1xf32>
    %61 = vector.shape_cast %60 : vector<1xf32> to vector<1x1x1xf32>
    %62 = vector.extract %61[0, 0, 0] : f32 from vector<1x1x1xf32>
    %63 = tpu.iota {dimensions = array<i32: 1>} : vector<1x8x128xi32>
    %64 = tpu.iota {dimensions = array<i32: 2>} : vector<1x8x128xi32>
    %cst_28 = arith.constant 0.000000e+00 : f32
    %65 = vector.broadcast %cst_28 : f32 to vector<1x8x128xf32>
    %c0_i32 = arith.constant 0 : i32
    %66 = vector.broadcast %c0_i32 : i32 to vector<1x8x128xi32>
    %67 = arith.cmpi eq, %63, %66 : vector<1x8x128xi32>
    %c0_i32_29 = arith.constant 0 : i32
    %68 = vector.broadcast %c0_i32_29 : i32 to vector<1x8x128xi32>
    %69 = arith.cmpi eq, %64, %68 : vector<1x8x128xi32>
    %70 = arith.andi %67, %69 : vector<1x8x128xi1>
    %71 = vector.broadcast %20 : f32 to vector<1x8x128xf32>
    %72 = arith.select %70, %71, %65 : vector<1x8x128xi1>, vector<1x8x128xf32>
    %c0_i32_30 = arith.constant 0 : i32
    %73 = vector.broadcast %c0_i32_30 : i32 to vector<1x8x128xi32>
    %74 = arith.cmpi eq, %63, %73 : vector<1x8x128xi32>
    %c1_i32 = arith.constant 1 : i32
    %75 = vector.broadcast %c1_i32 : i32 to vector<1x8x128xi32>
    %76 = arith.cmpi eq, %64, %75 : vector<1x8x128xi32>
    %77 = arith.andi %74, %76 : vector<1x8x128xi1>
    %78 = vector.broadcast %41 : f32 to vector<1x8x128xf32>
    %79 = arith.select %77, %78, %72 : vector<1x8x128xi1>, vector<1x8x128xf32>
    %c0_i32_31 = arith.constant 0 : i32
    %80 = vector.broadcast %c0_i32_31 : i32 to vector<1x8x128xi32>
    %81 = arith.cmpi eq, %63, %80 : vector<1x8x128xi32>
    %c2_i32 = arith.constant 2 : i32
    %82 = vector.broadcast %c2_i32 : i32 to vector<1x8x128xi32>
    %83 = arith.cmpi eq, %64, %82 : vector<1x8x128xi32>
    %84 = arith.andi %81, %83 : vector<1x8x128xi1>
    %85 = vector.broadcast %62 : f32 to vector<1x8x128xf32>
    %86 = arith.select %84, %85, %79 : vector<1x8x128xi1>, vector<1x8x128xf32>
    %c0_32 = arith.constant 0 : index
    %c0_33 = arith.constant 0 : index
    %c0_34 = arith.constant 0 : index
    %87 = vector.load %arg10[%c0_32, %c0_33, %c0_34] : memref<1x8x128xf32, #tpu.memory_space<vmem>>, vector<1x8x128xf32>
    tpu.vector_store %arg10[%c0_32, %c0_33, %c0_34], %86 {strides = array<i32>} : memref<1x8x128xf32, #tpu.memory_space<vmem>>, vector<1x8x128xf32>,
    return
  }
  func.func @transform_0(%arg0: i32) -> (i32, i32) {
    %c0_i32 = arith.constant 0 : i32
    %c0_i32_0 = arith.constant 0 : i32
    return %arg0, %c0_i32 : i32, i32
  }
  func.func @transform_1(%arg0: i32) -> (i32, i32) {
    %c0_i32 = arith.constant 0 : i32
    %c0_i32_0 = arith.constant 0 : i32
    return %arg0, %c0_i32 : i32, i32
  }
  func.func @transform_2(%arg0: i32) -> (i32, i32) {
    %c0_i32 = arith.constant 0 : i32
    %c0_i32_0 = arith.constant 0 : i32
    return %arg0, %c0_i32 : i32, i32
  }
  func.func @transform_3(%arg0: i32) -> (i32, i32) {
    %c0_i32 = arith.constant 0 : i32
    %c0_i32_0 = arith.constant 0 : i32
    return %arg0, %c0_i32 : i32, i32
  }
  func.func @transform_4(%arg0: i32) -> (i32, i32) {
    %c0_i32 = arith.constant 0 : i32
    %c0_i32_0 = arith.constant 0 : i32
    return %arg0, %c0_i32 : i32, i32
  }
  func.func @transform_5(%arg0: i32) -> (i32, i32) {
    %c0_i32 = arith.constant 0 : i32
    %c0_i32_0 = arith.constant 0 : i32
    return %arg0, %c0_i32 : i32, i32
  }
  func.func @transform_6(%arg0: i32) -> (i32, i32) {
    %c0_i32 = arith.constant 0 : i32
    %c0_i32_0 = arith.constant 0 : i32
    return %arg0, %c0_i32 : i32, i32
  }
  func.func @transform_7(%arg0: i32) -> (i32, i32) {
    %c0_i32 = arith.constant 0 : i32
    %c0_i32_0 = arith.constant 0 : i32
    return %arg0, %c0_i32 : i32, i32
  }
  func.func @transform_8(%arg0: i32) -> (i32, i32) {
    %c0_i32 = arith.constant 0 : i32
    %c0_i32_0 = arith.constant 0 : i32
    return %arg0, %c0_i32 : i32, i32
  }
  func.func @transform_9(%arg0: i32) -> (i32, i32, i32) {
    %c0_i32 = arith.constant 0 : i32
    %c0_i32_0 = arith.constant 0 : i32
    %c0_i32_1 = arith.constant 0 : i32
    return %arg0, %c0_i32, %c0_i32_0 : i32, i32, i32
  }
}

</mosaic_0001>

<bundles_post_ra>
// kernel: tpu_custom_call.1
= control target key start
LH: loop header
LB: loop body
LE: loop exit
PB: predicated region body
PF: predicated region fallthrough
CT: control target
= control target key end

     0   :  { %15 = vsyncpa [#allocation3], 0  ;;  %s582_s0 = inlined_call_operand.hbm [shape: f32[8,128], index: 0, kind: input, shape index: {}]   ;;  %s583_s1 = inlined_call_operand.hbm [shape: f32[8,128], index: 1, kind: input, shape index: {}]   ;;  %s584_s2 = inlined_call_operand.hbm [shape: f32[8,64], index: 2, kind: input, shape index: {}]   ;;  %s585_s3 = inlined_call_operand.hbm [shape: f32[8,64], index: 3, kind: input, shape index: {}]   ;;  %s586_s4 = inlined_call_operand.hbm [shape: f32[8,32], index: 4, kind: input, shape index: {}]   ;;  %s587_s5 = inlined_call_operand.vmem [shape: f32[8,32], index: 5, kind: input, shape index: {}]   ;;  %s588_s6 = inlined_call_operand.hbm [shape: f32[8,128], index: 6, kind: output, shape index: {0}]   ;;  %s589_s7 = inlined_call_operand.hbm [shape: f32[8,64], index: 7, kind: output, shape index: {1}]   ;;  %s590_s8 = inlined_call_operand.hbm [shape: f32[8,32], index: 8, kind: output, shape index: {2}]   ;;  %s591_s9 = inlined_call_operand.hbm [shape: f32[1,8,128], index: 9, kind: output, shape index: {3}]  }
   0x1   :  { %16 = vsyncpa [#allocation6], 0 }
   0x2   :  { %17 = vsyncpa [#allocation9], 0 }
   0x3   :  { %18 = vsyncpa [#allocation4], 0 }
   0x4   :  { %19 = vsyncpa [#allocation13], 0 }
   0x5   :  { %20 = vsyncpa [#allocation16], 0  ;;  %s487_s30 = smov [#allocation5]   ;;  %s488_s11 = smov [#allocation8]  }
   0x6   :  { %s37_s10 = sshll.u32 %s487_s30, 4  ;;  %s57_s12 = sshll.u32 %s488_s11, 4  ;;  %s38_s10 = int_to_ptr.vmem [resolvable:$true] %s37_s10  ;;  %s58_s12 = int_to_ptr.vmem [resolvable:$true] %s57_s12 }
   0x7   :  { %s303_s13 = scalar_lea.vmem %s38_s10, 128  ;;  %p308_p1 = scmp.lt.s32.totalorder %s38_s10, %s38_s10 }
   0x8   :  { %p304_p0 = scmp.ne.s32.totalorder %s38_s10, %s303_s13  ;;  %p309_p2 = scmp.lt.s32.totalorder %s303_s13, %s303_s13 }
   0xa   :  { %p310_p3 = por %p309_p2, %p308_p1 }
   0xc   :  { %p311_p4 = pnand %p310_p3, %p304_p0 }
   0xe   :  { %314 = shalt.err (!%p311_p4)
}
   0xf   :  { %40 = dma.hbm_to_vmem [thread:$0]  %s583_s1, 128, %s38_s10, [#allocation6]  }
  0x10   :  { %s323_s16 = scalar_lea.vmem %s58_s12, 128  ;;  %p328_p6 = scmp.lt.s32.totalorder %s58_s12, %s58_s12 }
  0x11   :  { %p324_p5 = scmp.ne.s32.totalorder %s58_s12, %s323_s16  ;;  %p329_p7 = scmp.lt.s32.totalorder %s323_s16, %s323_s16 }
  0x13   :  { %p330_p8 = por %p329_p7, %p328_p6 }
  0x15   :  { %p331_p9 = pnand %p330_p8, %p324_p5 }
  0x17   :  { %334 = shalt.err (!%p331_p9)
}
  0x18   :  { %60 = dma.hbm_to_vmem [thread:$0]  %s585_s3, 128, %s58_s12, [#allocation9]  }
  0x19   :  { %s489_s19 = smov [#allocation2]   ;;  %s490_s21 = smov [#allocation7]  }
  0x1a   :  { %s27_s20 = sshll.u32 %s489_s19, 4  ;;  %s47_s22 = sshll.u32 %s490_s21, 4  ;;  %s28_s20 = int_to_ptr.vmem [resolvable:$true] %s27_s20  ;;  %s48_s22 = int_to_ptr.vmem [resolvable:$true] %s47_s22 }
  0x1b   :  { %s343_s23 = scalar_lea.vmem %s28_s20, 128  ;;  %p348_p11 = scmp.lt.s32.totalorder %s28_s20, %s28_s20 }
  0x1c   :  { %p344_p10 = scmp.ne.s32.totalorder %s28_s20, %s343_s23  ;;  %p349_p12 = scmp.lt.s32.totalorder %s343_s23, %s343_s23 }
  0x1e   :  { %p350_p13 = por %p349_p12, %p348_p11 }
  0x20   :  { %p351_p0 = pnand %p350_p13, %p344_p10 }
  0x22   :  { %354 = shalt.err (!%p351_p0)
}
  0x23   :  { %30 = dma.hbm_to_vmem [thread:$0]  %s582_s0, 128, %s28_s20, [#allocation3]  }
  0x24   :  { %s363_s25 = scalar_lea.vmem %s48_s22, 128  ;;  %p368_p2 = scmp.lt.s32.totalorder %s48_s22, %s48_s22 }
  0x25   :  { %p364_p1 = scmp.ne.s32.totalorder %s48_s22, %s363_s25  ;;  %p369_p3 = scmp.lt.s32.totalorder %s363_s25, %s363_s25 }
  0x27   :  { %p370_p4 = por %p369_p3, %p368_p2 }
  0x29   :  { %p371_p5 = pnand %p370_p4, %p364_p1 }
  0x2b   :  { %374 = shalt.err (!%p371_p5)
}
  0x2c   :  { %50 = dma.hbm_to_vmem [thread:$0]  %s584_s2, 128, %s48_s22, [#allocation6]  }
  0x2d   :  { %s491_s27 = smov [#allocation10]  }
  0x2e   :  { %s67_s28 = sshll.u32 %s491_s27, 4  ;;  %s68_s28 = int_to_ptr.vmem [resolvable:$true] %s67_s28 }
  0x2f   :  { %s383_s29 = scalar_lea.vmem %s68_s28, 128  ;;  %p388_p7 = scmp.lt.s32.totalorder %s68_s28, %s68_s28 }
  0x30   :  { %p384_p6 = scmp.ne.s32.totalorder %s68_s28, %s383_s29  ;;  %p389_p8 = scmp.lt.s32.totalorder %s383_s29, %s383_s29 }
  0x32   :  { %p390_p9 = por %p389_p8, %p388_p7 }
  0x34   :  { %p391_p10 = pnand %p390_p9, %p384_p6 }
  0x36   :  { %394 = shalt.err (!%p391_p10)
}
  0x37   :  { %70 = dma.hbm_to_vmem [thread:$0]  %s586_s4, 128, %s68_s28, [#allocation9]  }
  0x38   :  { %475 = dma.done.wait [#allocation3], 128  }
  0x39   :  { %476 = vsyncadd [#allocation3], 4294967168 }
  0x3a   :  { %477 = dma.done.wait [#allocation6], 256  }
  0x3b   :  { %478 = vsyncadd [#allocation6], 4294967040 }
  0x3c   :  { %479 = dma.done.wait [#allocation9], 256  }
  0x3d   :  { %480 = vsyncadd [#allocation9], 4294967040  ;;  %v88_v0 = vld [vmem:[#allocation2] sm:$0xff]  ;;  %v120_v4 = vld [vmem:[#allocation7] sm:$0xff]  ;;  %v492_v7 = vmov 0.0   ;;  %vm176_vm1 = vcmask 261120  }
  0x3e   :  { %v154_v1 = vld [vmem:[#allocation10] sm:$0xff]  ;;  %v93_v2 = vand.u32 2147483647, %v88_v0  ;;  %v125_v10 = vand.u32 2147483647, %v120_v4  ;;  %v89_v23 = vld [vmem:[#allocation5] sm:$0xff] }
  0x3f   :  { %v155_v3 = vld [vmem:[%s587_s5] sm:$0xff]  ;;  %v159_v5 = vand.u32 2147483647, %v154_v1  ;;  %v90_v26 = vmax.f32 %v88_v0, 0.0  ;;  %v91_v27 = vmul.f32 %v89_v23, %v88_v0  ;;  %v121_v30 = vld [vmem:[#allocation8] sm:$0xff]  ;;  %v156_v31 = vmax.f32 %v154_v1, 0.0 }
  0x40   :  { %vm173_vm0 = vcmp.gt.f32.partialorder %v155_v3, 0.0  ;;  %v94_v6 = vsub.f32 0.0, %v93_v2  ;;  %v126_v13 = vsub.f32 0.0, %v125_v10  ;;  %v157_v32 = vmul.f32 %v155_v3, %v154_v1  ;;  %s493_s4 = smov [#allocation12]   ;;  %s494_s11 = smov [#allocation11]  }
  0x41   :  { %v266_v8 = vsel %vm173_vm0, 1.0, %v492_v7  ;;  %v160_v9 = vsub.f32 0.0, %v159_v5  ;;  %v122_v36 = vmax.f32 %v120_v4, 0.0  ;;  %v123_v37 = vmul.f32 %v121_v30, %v120_v4  ;;  %s222_s5 = sshll.u32 %s493_s4, 4  ;;  %s212_s12 = sshll.u32 %s494_s11, 4  ;;  %s223_s5 = int_to_ptr.vmem [resolvable:$true] %s222_s5  ;;  %s213_s12 = int_to_ptr.vmem [resolvable:$true] %s212_s12 }
  0x42   :  { %177 = vst.msk [vmem:[#allocation14] sm:$0xff] %vm176_vm1, %v266_v8  ;;  %v95_v11 = vmul.f32 1.442695, %v94_v6  ;;  %v127_v14 = vmul.f32 1.442695, %v126_v13  ;;  %v92_v40 = vsub.f32 %v90_v26, %v91_v27  ;;  %v158_v44 = vsub.f32 %v156_v31, %v157_v32  ;;  %s395_s13 = scalar_lea.vmem %s223_s5, 128  ;;  %p400_p12 = scmp.lt.s32.totalorder %s223_s5, %s223_s5 }
  0x43   :  { %v161_v12 = vmul.f32 1.442695, %v160_v9  ;;  %v124_v49 = vsub.f32 %v122_v36, %v123_v37  ;;  %vm142_vm5 = vcmask 523264   ;;  %vm139_vm6 = vcmp.gt.f32.partialorder %v121_v30, 0.0  ;;  %p396_p11 = scmp.ne.s32.totalorder %s223_s5, %s395_s13  ;;  %p401_p13 = scmp.lt.s32.totalorder %s395_s13, %s395_s13 }
  0x44   :  { %283 = vpow2.f32 %v95_v11  ;;  %v265_v58 = vsel %vm139_vm6, 1.0, %v492_v7  ;;  %vm107_vm7 = vcmp.gt.f32.partialorder %v89_v23, 0.0 }
  0x45   :  { %285 = vpow2.f32 %v161_v12  ;;  %143 = vst.msk [vmem:[#allocation12] sm:$0xff] %vm142_vm5, %v265_v58  ;;  %v264_v59 = vsel %vm107_vm7, 1.0, %v492_v7  ;;  %p402_p0 = por %p401_p13, %p400_p12 }
  0x46   :  { %287 = vpow2.f32 %v127_v14 }
  0x47   :  { %p403_p1 = pnand %p402_p0, %p396_p11 }
  0x51   :  { %v284_v15 = vpop.eup %283 }
  0x52   :  { %v286_v16 = vpop.eup %285  ;;  %v97_v17 = vadd.f32 1.0, %v284_v15  ;;  %v100_v21 = vmul.f32 -0.5, %v284_v15  ;;  %v103_v28 = vand.u32 2147483647, %v284_v15 }
  0x53   :  { %v163_v18 = vadd.f32 1.0, %v286_v16  ;;  %v288_v19 = vpop.eup %287  ;;  %v166_v22 = vmul.f32 -0.5, %v286_v16  ;;  %v169_v33 = vand.u32 2147483647, %v286_v16 }
  0x54   :  { %289 = vlog2.f32 %v97_v17  ;;  %v129_v20 = vadd.f32 1.0, %v288_v19  ;;  %v132_v24 = vmul.f32 -0.5, %v288_v19  ;;  %v101_v25 = vadd.f32 1.0, %v100_v21 }
  0x55   :  { %291 = vlog2.f32 %v163_v18  ;;  %v167_v29 = vadd.f32 1.0, %v166_v22  ;;  %v135_v38 = vand.u32 2147483647, %v288_v19  ;;  %vm104_vm2 = vcmp.lt.f32.partialorder %v103_v28, 0.0004427343 }
  0x56   :  { %293 = vlog2.f32 %v129_v20  ;;  %v133_v34 = vadd.f32 1.0, %v132_v24  ;;  %v102_v35 = vmul.f32 %v284_v15, %v101_v25  ;;  %vm170_vm3 = vcmp.lt.f32.partialorder %v169_v33, 0.0004427343 }
  0x57   :  { %v168_v41 = vmul.f32 %v286_v16, %v167_v29  ;;  %vm136_vm4 = vcmp.lt.f32.partialorder %v135_v38, 0.0004427343 }
  0x58   :  { %v134_v46 = vmul.f32 %v288_v19, %v133_v34 }
  0x61   :  { %v290_v39 = vpop.eup %289 }
  0x62   :  { %v292_v42 = vpop.eup %291  ;;  %v99_v43 = vmul.f32 0.6931472, %v290_v39 }
  0x63   :  { %v165_v45 = vmul.f32 0.6931472, %v292_v42  ;;  %v294_v47 = vpop.eup %293 }
  0x64   :  { %v105_v48 = vsel %vm104_vm2, %v102_v35, %v99_v43  ;;  %v131_v52 = vmul.f32 0.6931472, %v294_v47 }
  0x65   :  { %v106_v50 = vadd.f32 %v105_v48, %v92_v40  ;;  %v171_v51 = vsel %vm170_vm3, %v168_v41, %v165_v45 }
  0x66   :  { %v172_v53 = vadd.f32 %v171_v51, %v158_v44  ;;  %v137_v54 = vsel %vm136_vm4, %v134_v46, %v131_v52 }
  0x67   :  { %111 = vadd.xlane.f32.xlu0 %v106_v50  ;;  %v138_v56 = vadd.f32 %v137_v54, %v124_v49 }
  0x68   :  { %v178_v55 = vsel %vm176_vm1, %v172_v53, 0.0 }
  0x69   :  { %179 = vadd.xlane.f32.xlu1 %v178_v55  ;;  %v144_v57 = vsel %vm142_vm5, %v138_v56, 0.0 }
  0x6b   :  { %145 = vadd.xlane.f32.xlu0 %v144_v57 }
  0x6c   :  { %406 = shalt.err (!%p403_p1)
}
  0x6d   :  { %225 = dma.vmem_to_hbm [thread:$0]  %s223_s5, 128, %s589_s7, [#allocation13]   ;;  %110 = vst [vmem:[#allocation11] sm:$0xff] %v264_v59 }
  0x6e   :  { %s415_s16 = scalar_lea.vmem %s213_s12, 128  ;;  %p420_p3 = scmp.lt.s32.totalorder %s213_s12, %s213_s12 }
  0x6f   :  { %p416_p2 = scmp.ne.s32.totalorder %s213_s12, %s415_s16  ;;  %p421_p4 = scmp.lt.s32.totalorder %s415_s16, %s415_s16 }
  0x71   :  { %p422_p5 = por %p421_p4, %p420_p3 }
  0x73   :  { %p423_p6 = pnand %p422_p5, %p416_p2 }
  0x75   :  { %426 = shalt.err (!%p423_p6)
}
  0x76   :  { %215 = dma.vmem_to_hbm [thread:$0]  %s213_s12, 128, %s588_s6, [#allocation4]  }
  0x77   :  { %s495_s19 = smov [#allocation14]  }
  0x78   :  { %s232_s20 = sshll.u32 %s495_s19, 4  ;;  %s233_s20 = int_to_ptr.vmem [resolvable:$true] %s232_s20 }
  0x79   :  { %s435_s21 = scalar_lea.vmem %s233_s20, 128  ;;  %p440_p8 = scmp.lt.s32.totalorder %s233_s20, %s233_s20 }
  0x7a   :  { %p436_p7 = scmp.ne.s32.totalorder %s233_s20, %s435_s21  ;;  %p441_p9 = scmp.lt.s32.totalorder %s435_s21, %s435_s21 }
  0x7c   :  { %p442_p10 = por %p441_p9, %p440_p8 }
  0x7e   :  { %p443_p11 = pnand %p442_p10, %p436_p7 }
  0x80   :  { %446 = shalt.err (!%p443_p11)
}
  0x81   :  { %235 = dma.vmem_to_hbm [thread:$0]  %s233_s20, 128, %s590_s8, [#allocation13]   ;;  %v188_v17 = vlaneseq }
  0x82   :  { %s496_s8 = smov [#allocation15]  }
  0x83   :  { %v189_v18 = vshrl.u32 %v188_v17, 7  ;;  %v191_v19 = vand.u32 127, %v188_v17  ;;  %s242_s23 = sshll.u32 %s496_s8, 4  ;;  %s243_s23 = int_to_ptr.vmem [resolvable:$true] %s242_s23 }
  0x84   :  { %s455_s25 = scalar_lea.vmem %s243_s23, 128  ;;  %p460_p13 = scmp.lt.s32.totalorder %s243_s23, %s243_s23 }
  0x85   :  { %vm192_vm8 = vcmp.eq.s32.totalorder %v189_v18, 0  ;;  %vm193_vm9 = vcmp.eq.s32.totalorder %v191_v19, 0  ;;  %vm197_vm10 = vcmp.eq.s32.totalorder %v191_v19, 1  ;;  %vm201_vm11 = vcmp.eq.s32.totalorder %v191_v19, 2  ;;  %p456_p12 = scmp.ne.s32.totalorder %s243_s23, %s455_s25  ;;  %p461_p0 = scmp.lt.s32.totalorder %s455_s25, %s455_s25 }
  0x86   :  { %vm194_vm12 = vmand %vm192_vm8, %vm193_vm9 }
  0x87   :  { %vm198_vm13 = vmand %vm192_vm8, %vm197_vm10  ;;  %p462_p1 = por %p461_p0, %p460_p13 }
  0x88   :  { %vm202_vm14 = vmand %vm192_vm8, %vm201_vm11 }
  0x89   :  { %p463_p2 = pnand %p462_p1, %p456_p12 }
  0xf0   :  { %v112_v60 = vpop.xlane.xlu0 %111 }
  0xf1   :  { %v113_v61 = vrot.slane %v112_v60, 4 }
  0xf2   :  { %v180_v62 = vpop.xlane.xlu1 %179 }
  0xf3   :  { %v114_v63 = vadd.f32 %v113_v61, %v112_v60  ;;  %v181_v0 = vrot.slane %v180_v62, 4 }
  0xf4   :  { %v146_v1 = vpop.xlane.xlu0 %145 }
  0xf5   :  { %v115_v2 = vrot.slane %v114_v63, 2  ;;  %v182_v3 = vadd.f32 %v181_v0, %v180_v62  ;;  %v147_v4 = vrot.slane %v146_v1, 4 }
  0xf7   :  { %v183_v5 = vrot.slane %v182_v3, 2  ;;  %v148_v6 = vadd.f32 %v147_v4, %v146_v1  ;;  %v116_v7 = vadd.f32 %v115_v2, %v114_v63 }
  0xf9   :  { %v184_v8 = vadd.f32 %v183_v5, %v182_v3  ;;  %v149_v9 = vrot.slane %v148_v6, 2  ;;  %v117_v10 = vrot.slane %v116_v7, 1 }
  0xfb   :  { %v150_v11 = vadd.f32 %v149_v9, %v148_v6  ;;  %v118_v12 = vadd.f32 %v117_v10, %v116_v7  ;;  %v185_v13 = vrot.slane %v184_v8, 1 }
  0xfd   :  { %267 = vpush %v118_v12  ;;  %v151_v14 = vrot.slane %v150_v11, 1  ;;  %v186_v16 = vadd.f32 %v185_v13, %v184_v8 }
  0xff   :  { %v152_v15 = vadd.f32 %v151_v14, %v150_v11 }
 0x101   :  { %269 = vpush %v152_v15 }
 0x102   :  { %271 = vpush %v186_v16 }
 0x12e   :  { %s268_s6 = spop %267 }
 0x12f   :  { %v195_v20 = vstv %s268_s6 }
 0x130   :  { %v196_v21 = vsel %vm194_vm12, %v195_v20, 0.0 }
 0x132   :  { %s270_s1 = spop %269 }
 0x133   :  { %v199_v22 = vstv %s270_s1  ;;  %s272_s24 = spop %271 }
 0x134   :  { %v200_v23 = vsel %vm198_vm13, %v199_v22, %v196_v21  ;;  %v203_v24 = vstv %s272_s24 }
 0x135   :  { %v204_v25 = vsel %vm202_vm14, %v203_v24, %v200_v23 }
 0x136   :  { %205 = vst [vmem:[#allocation15] sm:$0xff] %v204_v25 }
 0x137   :  { %466 = shalt.err (!%p463_p2)
}
 0x138   :  { %245 = dma.vmem_to_hbm [thread:$0]  %s243_s23, 128, %s591_s9, [#allocation16]  }
 0x139   :  { %481 = dma.done.wait [#allocation4], 128  }
 0x13a   :  { %482 = vsyncadd [#allocation4], 4294967168 }
 0x13b   :  { %483 = dma.done.wait [#allocation13], 256  }
 0x13c   :  { %484 = vsyncadd [#allocation13], 4294967040 }
 0x13d   :  { %485 = dma.done.wait [#allocation16], 128  }
 0x13e   :  { %486 = vsyncadd [#allocation16], 4294967168 }
 0x13f   :  { %258 = vsyncpa [#allocation3], 1 }
 0x140   :  { %259 = vsyncpa [#allocation6], 1 }
 0x141   :  { %260 = vsyncpa [#allocation9], 1 }
 0x142   :  { %261 = vsyncpa [#allocation4], 1 }
 0x143   :  { %262 = vsyncpa [#allocation13], 1 }
 0x144   :  { %263 = vsyncpa [#allocation16], 1 }

</bundles_post_ra>
